<compile_context>
chip_gen: v7x
topology: tpu7x:2x2x1
jax: 0.10.0
libtpu: 0.0.40
codegen_flags: <defaults>
</compile_context>

<pallas_src>
import math

import jax
import jax.numpy as jnp
from jax.experimental import pallas as pl
from jax.experimental.pallas import tpu as pltpu

_LANE = 128


def make_positional_encoding(embed_size: int, max_seq_length: int = 1024,
                             dtype=jnp.float32) -> jnp.ndarray:
    """Deterministic sinusoidal PE table, matching the PyTorch __init__ exactly.

    Stored in `dtype` (the model dtype) once at setup so the forward never pays a
    per-call slice+cast XLA op.
    """
    position = jnp.arange(0, max_seq_length, dtype=jnp.float32)[:, None]          # (L, 1)
    div_term = jnp.exp(
        jnp.arange(0, embed_size, 2, dtype=jnp.float32) * (-math.log(10000.0) / embed_size)
    )                                                                              # (ceil(E/2),)
    pe = jnp.zeros((max_seq_length, embed_size), dtype=jnp.float32)
    pe = pe.at[:, 0::2].set(jnp.sin(position * div_term))
    if embed_size % 2 == 0:
        pe = pe.at[:, 1::2].set(jnp.cos(position * div_term))
    else:
        pe = pe.at[:, 1::2].set(jnp.cos(position * div_term[:-1]))
    return pe.astype(dtype)  # (max_seq_length, embed_size)


def _pe_add_kernel(x_ref, pe_ref, o_ref):
    # Batch dim squeezed out by the BlockSpec; all refs are (TR, TC), same dtype.
    o_ref[...] = x_ref[...] + pe_ref[...]


def _vmem_budget_and_limit():
    """Per-buffer tile budget and explicit scoped-VMEM limit, by chip generation."""
    try:
        cap = int(pltpu.get_tpu_info().vmem_capacity_bytes)
    except Exception:
        cap = 64 << 20  # conservative: v7x per-TC VMEM
    # 6 streaming buffers (double-buffered x, pe, out).  2 MiB/buffer on small-VMEM
    # parts (v7x), 4 MiB on v5e/v6e — both sit at the ~85% HBM-roofline knee.
    budget = (4 << 20) if cap >= (96 << 20) else (2 << 20)
    limit = int(min(64 << 20, cap // 2))
    return budget, limit


def _choose_tiles(rows: int, cols: int, itemsize: int, sublane: int,
                  budget_bytes: int):
    """Pick (TR, TC): TR a multiple of `sublane` (or the full row extent when
    rows < sublane), TC a multiple of 128 (or the full column extent), with
    TR*TC*itemsize <= budget_bytes.  The grid uses cdiv + partial tail blocks,
    so neither TR nor TC has to divide the array — no full-extent fallback that
    could blow the scoped-VMEM limit.
    """
    strip = min(rows, sublane)
    if cols * itemsize * strip <= budget_bytes:
        tc = cols                                   # full extent: always legal
    else:
        tc = max((budget_bytes // (itemsize * strip)) // _LANE * _LANE, _LANE)
        tc = min(tc, cols)
    if rows <= sublane:
        tr = rows                                   # full extent: always legal
    else:
        max_rows = budget_bytes // max(tc * itemsize, 1)
        tr = max(min(max_rows, rows) // sublane * sublane, sublane)
    return tr, tc


def _tiled_broadcast_add(x: jnp.ndarray, pe: jnp.ndarray) -> jnp.ndarray:
    """x: (B, R, C); pe: (R, C), same dtype.  Returns x + pe[None]."""
    B, R, C = x.shape
    itemsize = jnp.dtype(x.dtype).itemsize
    sublane = max((4 // itemsize) * 8, 8)   # 8 for f32, 16 for bf16, 32 for int8/fp8
    budget, vmem_limit = _vmem_budget_and_limit()
    TR, TC = _choose_tiles(R, C, itemsize, sublane, budget)

    # Batch axis innermost (fastest): pe's block index (s, c) is constant across
    # consecutive steps, so Pallas skips the re-DMA and pe streams from HBM once.
    grid = (pl.cdiv(R, TR), pl.cdiv(C, TC), B)

    return pl.pallas_call(
        _pe_add_kernel,
        out_shape=jax.ShapeDtypeStruct((B, R, C), x.dtype),
        grid_spec=pltpu.PrefetchScalarGridSpec(
            num_scalar_prefetch=0,
            grid=grid,
            in_specs=[
                # Batch dim squeezed (None) -> kernel sees plain (TR, TC) tiles.
                pl.BlockSpec((None, TR, TC), lambda s, c, b: (b, s, c)),
                pl.BlockSpec((TR, TC), lambda s, c, b: (s, c)),
            ],
            out_specs=pl.BlockSpec((None, TR, TC), lambda s, c, b: (b, s, c)),
        ),
        compiler_params=pltpu.CompilerParams(
            dimension_semantics=("parallel", "parallel", "parallel"),
            vmem_limit_bytes=vmem_limit,
        ),
        cost_estimate=pl.CostEstimate(
            flops=B * R * C,
            transcendentals=0,
            # pe read once per tile (batch-innermost grid), x read + out written per batch.
            bytes_accessed=(2 * B + 1) * R * C * itemsize,
        ),
        # TODO(synk): consider input_output_aliases={0: 0} (donate x, write in place) at
        # call sites that no longer need x — saves an output allocation, not bandwidth.
    )(x, pe)


def positional_encoding_forward(x: jnp.ndarray, pe_full: jnp.ndarray) -> jnp.ndarray:
    """x: (B, S, E); pe_full: (max_seq_length, E).  Returns x + pe[:S] (broadcast over B)."""
    B, S, E = x.shape
    if S > pe_full.shape[0]:
        raise ValueError(
            f"sequence length {S} exceeds positional-encoding table length {pe_full.shape[0]}"
        )
    pe_slice = pe_full[:S, :]
    if pe_slice.dtype != x.dtype:
        # Only pays a cast when the table wasn't built in the model dtype.
        pe_slice = pe_slice.astype(x.dtype)

    # Lane-dense repack (all reshapes below are contiguous => semantics-preserving for
    # a purely elementwise per-batch-slice add):
    #  1. E already lane-aligned: keep (S, E).
    #  2. S*E lane-aligned: fold (S, E) -> (S*E/128, 128) so every store is unmasked.
    #  3. Otherwise: flatten each batch slice to a single row of length S*E and tile it
    #     in 128-lane multiples; only the final tail block can hit a masked store.
    if E % _LANE == 0:
        rows, cols = S, E
    elif (S * E) % _LANE == 0:
        rows, cols = (S * E) // _LANE, _LANE
    else:
        rows, cols = 1, S * E

    out = _tiled_broadcast_add(x.reshape(B, rows, cols), pe_slice.reshape(rows, cols))
    return out.reshape(B, S, E)
    # TODO(synk): at the system level, fuse this add into the neighboring embedding /
    # dropout op at the call site — a standalone elementwise add is pinned at
    # 2*B*S*E HBM bytes no matter how it is tiled.


if __name__ == "__main__":
    # Small shapes consistent with the forward: x is (batch, seq, embed)
    B, S, E = 2, 8, 32
    MAX_SEQ = 64

    key = jax.random.PRNGKey(0)
    x = jax.random.normal(key, (B, S, E), dtype=jnp.float32)

    # Table is built once, in the model dtype (no per-forward cast).
    pe = make_positional_encoding(E, MAX_SEQ, dtype=x.dtype)

    out = positional_encoding_forward(x, pe)
    out = jax.block_until_ready(out)

    # Reference check (pure JAX) — same semantics as the PyTorch forward.
    ref = x + pe[None, :S, :].astype(x.dtype)
    assert out.shape == (B, S, E)
    assert jnp.allclose(out, ref, atol=1e-6, rtol=1e-6)

    print("KERNEL_OK")
</pallas_src>

<mosaic_0001>
module attributes {stable_mosaic.version = 11 : i64} {
  func.func @_pe_add_kernel(%arg0: i32, %arg1: i32, %arg2: i32, %arg3: memref<1x2x128xf32, #tpu.memory_space<vmem>>, %arg4: memref<2x128xf32, #tpu.memory_space<vmem>>, %arg5: memref<1x2x128xf32, #tpu.memory_space<vmem>>) attributes {dimension_semantics = [#tpu.dimension_semantics<parallel>, #tpu.dimension_semantics<parallel>, #tpu.dimension_semantics<parallel>], iteration_bounds = array<i64: 1, 1, 2>, scalar_prefetch = 0 : i64, scratch_operands = 0 : i64, tpu.core_type = #tpu.core_type<tc>, window_params = [{transform_indices = @transform_0, window_bounds = array<i64: 1, 2, 128>}, {transform_indices = @transform_1, window_bounds = array<i64: 2, 128>}, {transform_indices = @transform_2, window_bounds = array<i64: 1, 2, 128>}]} {
    %c0 = arith.constant 0 : index
    %c0_0 = arith.constant 0 : index
    %c0_1 = arith.constant 0 : index
    %0 = vector.load %arg3[%c0, %c0_0, %c0_1] : memref<1x2x128xf32, #tpu.memory_space<vmem>>, vector<1x2x128xf32>
    %1 = vector.shape_cast %0 : vector<1x2x128xf32> to vector<2x128xf32>
    %c0_2 = arith.constant 0 : index
    %c0_3 = arith.constant 0 : index
    %2 = vector.load %arg4[%c0_2, %c0_3] : memref<2x128xf32, #tpu.memory_space<vmem>>, vector<2x128xf32>
    %3 = arith.addf %1, %2 : vector<2x128xf32>
    %c0_4 = arith.constant 0 : index
    %c0_5 = arith.constant 0 : index
    %c0_6 = arith.constant 0 : index
    %4 = vector.load %arg5[%c0_4, %c0_5, %c0_6] : memref<1x2x128xf32, #tpu.memory_space<vmem>>, vector<1x2x128xf32>
    %5 = vector.shape_cast %4 : vector<1x2x128xf32> to vector<2x128xf32>
    %6 = vector.shape_cast %3 : vector<2x128xf32> to vector<1x2x128xf32>
    tpu.vector_store %arg5[%c0_4, %c0_5, %c0_6], %6 {strides = array<i32>} : memref<1x2x128xf32, #tpu.memory_space<vmem>>, vector<1x2x128xf32>,
    return
  }
  func.func @transform_0(%arg0: i32, %arg1: i32, %arg2: i32) -> (i32, i32, i32) {
    %c0_i32 = arith.constant 0 : i32
    return %arg2, %arg0, %arg1 : i32, i32, i32
  }
  func.func @transform_1(%arg0: i32, %arg1: i32, %arg2: i32) -> (i32, i32) {
    %c0_i32 = arith.constant 0 : i32
    return %arg0, %arg1 : i32, i32
  }
  func.func @transform_2(%arg0: i32, %arg1: i32, %arg2: i32) -> (i32, i32, i32) {
    %c0_i32 = arith.constant 0 : i32
    return %arg2, %arg0, %arg1 : i32, i32, i32
  }
}

</mosaic_0001>

<bundles_post_ra>
// kernel: tpu_custom_call.1
= control target key start
LH: loop header
LB: loop body
LE: loop exit
PB: predicated region body
PF: predicated region fallthrough
CT: control target
= control target key end

     0   :  { %7 = vsyncpa [#allocation3], 0  ;;  %s721_s0 = inlined_call_operand.hbm [shape: f32[2,2,128], index: 0, kind: input, shape index: {}]   ;;  %s722_s1 = inlined_call_operand.vmem [shape: f32[2,128], index: 1, kind: input, shape index: {}]   ;;  %s723_s2 = inlined_call_operand.hbm [shape: f32[2,2,128], index: 2, kind: output, shape index: {}]  }
   0x1   :  { %9 = vsyncpa [#allocation3 + $0x1], 0 }
   0x2   :  { %10 = vsyncpa [#allocation4], 0 }
   0x3   :  { %12 = vsyncpa [#allocation4 + $0x1], 0  ;;  %s546_s9 = smov 0   ;;  %s548_s10 = smov 0  }
   0x4   :  { %s550_s11 = smov 0   ;;  %s552_s12 = smov 0  }
   0x5   :  { %s554_s13 = smov 0   ;;  %s556_s14 = smov 0  }
   0x6 LB: > { %s339_s15 = sadd.s32 4294967295, %s527_s14   ;;  %s340_s16 = sadd.s32 4294967294, %s527_s14   ;;  %s527_s14 = sphi %s556_s14, %s18_s14   ;;  %s523_s13 = sphi %s554_s13, %s739_s13   ;;  %s519_s12 = sphi %s552_s12, %s738_s12   ;;  %s515_s11 = sphi %s550_s11, %s737_s11   ;;  %s511_s10 = sphi %s548_s10, %s736_s10   ;;  %s507_s9 = sphi %s546_s9, %s735_s9  }
   0x7   : > { %s30_s17 = sadd.s32 1, %s523_s13  ;;  %s48_s18 = sadd.s32 1, %s515_s11 }
   0x8   : > { %p31_p0 = scmp.ge.s32.totalorder %s30_s17, 2  ;;  %p55_p1 = scmp.ne.s32.totalorder %s515_s11, %s511_s10 }
   0x9   : > { %p56_p2 = scmp.eq.s32.totalorder %s527_s14, 0  ;;  %p61_p3 = scmp.ne.s32.totalorder %s511_s10, %s507_s9 }
   0xa   : > { %s741_s17 = smov (%p31_p0, %s30_s17), 0  ;;  %p62_p5 = scmp.eq.s32.totalorder %s339_s15, 0 }
   0xb   : > { %p587_p4 = por %p56_p2, %p55_p1  ;;  %s41_s20 = ssub.s32 %s523_s13, %s741_s17 }
   0xc   : > { %p117_p6 = scmp.eq.s32.totalorder %s339_s15, 1  ;;  %p46_p7 = scmp.eq.s32.totalorder %s41_s20, 0 }
   0xd   : > { %p593_p8 = por %p62_p5, %p61_p3  ;;  %p123_p10 = scmp.eq.s32.totalorder %s340_s16, 1 }
   0xe   : > { %p597_p9 = por %p117_p6, %p55_p1  ;;  %p365_p13 = scmp.lt.s32.totalorder %s527_s14, 2 }
   0xf   : > { %s602_s23 = scalar_select %p46_p7, %s515_s11, %s48_s18  }
  0x10   : > { %s727_s22 = scalar_select %p597_p9, 1, 0 }
  0x11   : > { %p604_p11 = por %p123_p10, %p61_p3  ;;  %s153_s25 = sand.u32 1, %s515_s11  }
  0x12   : > { %s344_s26 = sshll.u32 %s153_s25, 1  ;;  %s345_s27 = sshll.u32 %s523_s13, 5 }
  0x13   : > { %s728_s24 = scalar_select %p604_p11, 1, 0 }
  0x14   : > { %s615_s30 = scalar_lea.hbm %s721_s0, %s345_s27  ;;  %s157_s3 = scalar_lea.vmem [#allocation2], %s344_s26 }
  0x15   : > { %s166_s4 = sshll.u32 %s157_s3, 4  ;;  %p621_p0 = pnand %p365_p13, %p587_p4  ;;  %s617_s4 = int_to_ptr.vmem [resolvable:$true] %s166_s4 }
  0x16   : > { %s154_s6 = scalar_lea.sflag [#allocation3], %s153_s25  ;;  %s415_s7 = scalar_lea.hbm %s615_s30, 32 }
  0x17   : > { %p416_p3 = scmp.ne.s32.totalorder %s615_s30, %s415_s7  ;;  %p417_p5 = pneg %p621_p0 }
  0x18   : > { %s420_s16 = scalar_lea.hbm %s721_s0, 64  ;;  %p421_p4 = scmp.lt.u32.totalorder %s615_s30, %s721_s0 }
  0x19   : > { %p418_p6 = pnand %p417_p5, %p416_p3  ;;  %p422_p10 = scmp.lt.u32.totalorder %s420_s16, %s415_s7 }
  0x1a   : > { %p424_p12 = scmp.lt.u32.totalorder %s415_s7, %s615_s30 }
  0x1b   : > { %p419_p7 = pneg %p418_p6  ;;  %p423_p13 = por %p422_p10, %p421_p4 }
  0x1d   : > { %p425_p1 = por %p424_p12, %p423_p13 }
  0x1f   : > { %p426_p2 = pnand %p425_p1, %p419_p7 }
  0x21   : > { %429 = shalt.err (!%p426_p2)
}
  0x22   : > { %s430_s20 = scalar_lea.vmem %s617_s4, 32  ;;  %s529_s25 = smov [#allocation2]  }
  0x23   : > { %p431_p3 = scmp.ne.s32.totalorder %s617_s4, %s430_s20  ;;  %s435_s26 = sshll.u32 %s529_s25, 4  ;;  %s436_s26 = int_to_ptr.vmem [resolvable:$false] %s435_s26 }
  0x24   : > { %s437_s27 = scalar_lea.vmem %s436_s26, 64  ;;  %p438_p9 = scmp.lt.s32.totalorder %s617_s4, %s436_s26 }
  0x25   : > { %p433_p6 = pnand %p431_p3, %p417_p5  ;;  %p439_p4 = scmp.lt.s32.totalorder %s437_s27, %s430_s20 }
  0x27   : > { %p434_p11 = pneg %p433_p6  ;;  %p440_p10 = por %p439_p4, %p438_p9 }
  0x29   : > { %p441_p12 = pnand %p440_p10, %p434_p11 }
  0x2b   : > { %444 = shalt.err (!%p441_p12)
}
  0x2c   : > { %360 = dma.hbm_to_vmem [thread:$0]  (!%p621_p0), %s615_s30, 32, %s617_s4, %s154_s6  }
  0x2d   : > { %p730_p1 = scmp.lt.s32.totalorder %s527_s14, 3  ;;  %p731_p2 = scmp.ge.s32.totalorder %s527_s14, 1 }
  0x2f   : > { %p172_p5 = pnand %p731_p2, %p730_p1 }
  0x30   : > { %s657_s28 = sand.u32 (!%p172_p5), 1, %s511_s10  }
  0x31   : > { %175 = sbr.rel (%p172_p5) target bundleno = 83 (0x53), region = 28  ;;  %s347_s29 = sshll.u32 (!%p172_p5), %s657_s28, 1 }
  0x32   : > { %s178_s3 = scalar_lea.sflag (!%p172_p5), [#allocation3], %s657_s28  ;;  %s181_s7 = scalar_lea.vmem (!%p172_p5), [#allocation2], %s347_s29 }
  0x38   : > { %498 = dma.done.wait (%p593_p8), %s178_s3, 32  }
  0x39   : > { %500 = vsyncadd (%p593_p8), %s178_s3, 4294967264  ;;  %s208_s30 = scalar_lea.vmem [#allocation5], %s347_s29  ;;  %s350_s5 = sshll.u32 %s519_s12, 5  ;;  %v216_v0 = vld [vmem:[%s181_s7] sm:$0x3] }
  0x3a   : > { %s236_s4 = sshll.u32 %s208_s30, 4  ;;  %v217_v1 = vld [vmem:[%s722_s1] sm:$0x3]  ;;  %s674_s21 = scalar_lea.hbm %s723_s2, %s350_s5  ;;  %s669_s4 = int_to_ptr.vmem [resolvable:$true] %s236_s4 }
  0x3b   : > { %v218_v2 = vadd.f32 %v217_v1, %v216_v0  ;;  %s221_s18 = scalar_lea.sflag [#allocation4], %s657_s28  ;;  %s445_s19 = scalar_lea.vmem %s669_s4, 32 }
  0x3c   : > { %p446_p8 = scmp.ne.s32.totalorder %s669_s4, %s445_s19  ;;  %p732_p9 = scmp.ne.s32.totalorder %s727_s22, 0 }
  0x3d   : > { %219 = vst [vmem:[%s208_s30] sm:$0x3] %v218_v2  ;;  %s530_s12 = smov [#allocation5]  }
  0x3e   : > { %p447_p11 = pnand %p446_p8, %p732_p9  ;;  %s449_s20 = sshll.u32 %s530_s12, 4  ;;  %s450_s20 = int_to_ptr.vmem [resolvable:$false] %s449_s20 }
  0x3f   : > { %s451_s25 = scalar_lea.vmem %s450_s20, 64  ;;  %p452_p7 = scmp.lt.s32.totalorder %s669_s4, %s450_s20 }
  0x40   : > { %p448_p0 = pneg %p447_p11  ;;  %p453_p13 = scmp.lt.s32.totalorder %s451_s25, %s445_s19 }
  0x42   : > { %p454_p3 = por %p453_p13, %p452_p7 }
  0x44   : > { %p455_p6 = pnand %p454_p3, %p448_p0 }
  0x46   : > { %458 = shalt.err (!%p455_p6)
}
  0x47   : > { %s459_s26 = scalar_lea.hbm %s674_s21, 32  ;;  %s463_s29 = scalar_lea.hbm %s723_s2, 64 }
  0x48   : > { %p460_p4 = scmp.ne.s32.totalorder %s674_s21, %s459_s26  ;;  %p464_p1 = scmp.lt.u32.totalorder %s674_s21, %s723_s2 }
  0x49   : > { %p465_p2 = scmp.lt.u32.totalorder %s463_s29, %s459_s26  ;;  %p467_p8 = scmp.lt.u32.totalorder %s459_s26, %s674_s21 }
  0x4a   : > { %p461_p10 = pnand %p460_p4, %p732_p9 }
  0x4b   : > { %p466_p5 = por %p465_p2, %p464_p1 }
  0x4c   : > { %p462_p12 = pneg %p461_p10 }
  0x4d   : > { %p468_p11 = por %p467_p8, %p466_p5 }
  0x4f   : > { %p469_p0 = pnand %p468_p11, %p462_p12 }
  0x51   : > { %472 = shalt.err (!%p469_p0)
}
  0x52   : > { %355 = dma.vmem_to_hbm [thread:$0]  (%p732_p9), %s669_s4, 32, %s674_s21, %s221_s18  }
  0x53 PF: > { %s248_s30 = sand.u32 1, %s507_s9   ;;  %p733_p7 = scmp.ne.s32.totalorder %s728_s24, 0 }
  0x54   : > { %p734_p13 = scmp.ge.s32.totalorder %s527_s14, 2  ;;  %s249_s5 = scalar_lea.sflag [#allocation4], %s248_s30 }
  0x56   : > { %p362_p3 = pnand %p734_p13, %p733_p7 }
  0x58   : > { %502 = dma.done.wait (!%p362_p3), %s249_s5, 32  }
  0x59   : > { %504 = vsyncadd (!%p362_p3), %s249_s5, 4294967264  ;;  %s18_s14 = sadd.s32 1, %s527_s14   ;;  %s735_s9 = smov %s511_s10 }
  0x5a   : > { %p15_p6 = scmp.ge.s32.totalorder %s18_s14, 4   ;;  %s736_s10 = smov %s515_s11 }
  0x5b   : > { %s737_s11 = smov %s602_s23  ;;  %s738_s12 = smov %s523_s13 }
  0x5c   : > { %s739_s13 = smov %s741_s17  ;;  %17 = sbr.rel (!%p15_p6) target bundleno = 6 (0x6), region = 76 }
  0x63   :  { %254 = vsyncpa [#allocation3], 1 }
  0x64   :  { %256 = vsyncpa [#allocation3 + $0x1], 1 }
  0x65   :  { %257 = vsyncpa [#allocation4], 1 }
  0x66   :  { %259 = vsyncpa [#allocation4 + $0x1], 1 }

</bundles_post_ra>
